<compile_context>
chip_gen: v5e
topology: v5e:2x2
jax: 0.10.0
libtpu: 0.0.40
codegen_flags: <defaults>
</compile_context>

<pallas_src>
import jax
import jax.numpy as jnp
from jax.experimental import pallas as pl
from jax.experimental.pallas import tpu as pltpu

NEG_SLOPE = 0.01   # PyTorch nn.LeakyReLU default
P = 16             # padded feature width for every layer (max real width is 15)


def _leaky_relu(v):
    return jnp.where(v >= 0, v, NEG_SLOPE * v)


def _round_up(n, m):
    return ((n + m - 1) // m) * m


# ----------------------------------------------------------------------------
# Kernel: 4 padded (TB,P)@(P,P) matmuls, no concatenates, no relayouts.
# Padded rows/cols of every weight slab are explicit zeros, so the padded
# lanes stay exactly zero through every layer.
# ----------------------------------------------------------------------------
def ann_kernel(x_ref, w_ref, b_ref, out_ref):
    h = x_ref[...]                                                   # (TB, P)

    # fused layer 1: [soc_vec Linear(3,10) | n Linear(3,5)] + LeakyReLU
    h = _leaky_relu(
        jnp.dot(h, w_ref[0], preferred_element_type=jnp.float32) + b_ref[0])

    # fused layer 2: block-diag [soc_vec Linear(10,5) ; n Linear(5,1)]
    # -> result is already x1 || x2 (cols 0..5), no hstack needed.
    h = jnp.dot(h, w_ref[1], preferred_element_type=jnp.float32) + b_ref[1]

    # head: soc Linear(6,3) + LeakyReLU
    h = _leaky_relu(
        jnp.dot(h, w_ref[2], preferred_element_type=jnp.float32) + b_ref[2])

    # head: soc Linear(3,1)
    y = jnp.dot(h, w_ref[3], preferred_element_type=jnp.float32) + b_ref[3]

    out_ref[...] = y[:, 0:1].astype(out_ref.dtype)                   # (TB, 1)


# ----------------------------------------------------------------------------
# Wrapper-side parameter packing (done outside the kernel, amortized).
# ----------------------------------------------------------------------------
def pack_params(params):
    (w_sv1, b_sv1, w_sv2, b_sv2,
     w_n1, b_n1, w_n2, b_n2,
     w_s1, b_s1, w_s2, b_s2) = params

    # fused layer 1: (3, 15)
    w1 = jnp.concatenate([w_sv1, w_n1], axis=1)
    b1 = jnp.concatenate([b_sv1, b_n1], axis=1)
    # fused layer 2: block-diagonal (15, 6), explicit zeros off-diagonal
    w2 = jnp.zeros((15, 6), jnp.float32)
    w2 = w2.at[:10, :5].set(w_sv2).at[10:, 5:].set(w_n2)
    b2 = jnp.concatenate([b_sv2, b_n2], axis=1)
    # head layers
    w3, b3 = w_s1, b_s1
    w4, b4 = w_s2, b_s2

    w_pack = jnp.zeros((4, P, P), jnp.float32)
    b_pack = jnp.zeros((4, 1, P), jnp.float32)
    for l, (w, b) in enumerate([(w1, b1), (w2, b2), (w3, b3), (w4, b4)]):
        w_pack = w_pack.at[l, :w.shape[0], :w.shape[1]].set(w)
        b_pack = b_pack.at[l, :, :b.shape[1]].set(b)
    return w_pack, b_pack


def ann_forward(x, params, *, tile_b=256):
    """x: (B, F) float32 with F <= P. params: flat list of 12 arrays."""
    w_pack, b_pack = pack_params(params)

    B, F = x.shape
    tb = min(tile_b, _round_up(B, 8))       # batch tile (multiple of 8)
    b_pad = _round_up(B, tb)
    x_pad = jnp.zeros((b_pad, P), x.dtype).at[:B, :F].set(x)

    out = pl.pallas_call(
        ann_kernel,
        out_shape=jax.ShapeDtypeStruct((b_pad, 1), jnp.float32),
        grid=(b_pad // tb,),
        in_specs=[
            pl.BlockSpec((tb, P), lambda i: (i, 0)),        # x tiles over batch
            pl.BlockSpec((4, P, P), lambda i: (0, 0, 0)),   # packed weights (resident)
            pl.BlockSpec((4, 1, P), lambda i: (0, 0, 0)),   # packed biases (resident)
        ],
        out_specs=pl.BlockSpec((tb, 1), lambda i: (i, 0)),
        compiler_params=pltpu.CompilerParams(
            dimension_semantics=("parallel",)),
    )(x_pad, w_pack, b_pack)
    return out[:B]


# ----------------------------------------------------------------------------
# Reference / init (unfused params, mirrors the PyTorch module shapes).
# ----------------------------------------------------------------------------
def init_params(key, size=3):
    dims = [
        (size, 10), (10, 5),   # soc_vec
        (size, 5), (5, 1),     # n
        (6, 3), (3, 1),        # soc
    ]
    params = []
    for (fan_in, fan_out) in dims:
        key, kw, kb = jax.random.split(key, 3)
        bound = 1.0 / jnp.sqrt(fan_in)
        w = jax.random.uniform(kw, (fan_in, fan_out), jnp.float32, -bound, bound)
        b = jax.random.uniform(kb, (1, fan_out), jnp.float32, -bound, bound)
        params += [w, b]
    return params


def ann_reference(x, params):
    (w_sv1, b_sv1, w_sv2, b_sv2,
     w_n1, b_n1, w_n2, b_n2,
     w_s1, b_s1, w_s2, b_s2) = params
    x1 = _leaky_relu(x @ w_sv1 + b_sv1) @ w_sv2 + b_sv2
    x2 = _leaky_relu(x @ w_n1 + b_n1) @ w_n2 + b_n2
    xc = jnp.concatenate([x1, x2], axis=-1)
    return _leaky_relu(xc @ w_s1 + b_s1) @ w_s2 + b_s2


if __name__ == "__main__":
    key = jax.random.PRNGKey(0)
    key_x, key_x2, key_p = jax.random.split(key, 3)

    SIZE = 3
    params = init_params(key_p, size=SIZE)

    # small batch, single tile
    B = 8
    x = jax.random.normal(key_x, (B, SIZE), jnp.float32)
    out = jax.block_until_ready(ann_forward(x, params))
    ref = ann_reference(x, params)
    assert out.shape == (B, 1)
    assert jnp.allclose(out, ref, atol=1e-5, rtol=1e-5), "mismatch vs reference (B=8)"

    # ragged batch exercising the padded multi-tile grid path
    B2 = 37
    x2 = jax.random.normal(key_x2, (B2, SIZE), jnp.float32)
    out2 = jax.block_until_ready(ann_forward(x2, params, tile_b=16))
    ref2 = ann_reference(x2, params)
    assert out2.shape == (B2, 1)
    assert jnp.allclose(out2, ref2, atol=1e-5, rtol=1e-5), "mismatch vs reference (B=37)"

    print("KERNEL_OK")
</pallas_src>

<mosaic_0001>
module attributes {stable_mosaic.version = 11 : i64} {
  func.func @ann_kernel(%arg0: i32, %arg1: memref<8x16xf32, #tpu.memory_space<vmem>>, %arg2: memref<4x16x16xf32, #tpu.memory_space<vmem>>, %arg3: memref<4x1x16xf32, #tpu.memory_space<vmem>>, %arg4: memref<8x1xf32, #tpu.memory_space<vmem>>) attributes {dimension_semantics = [#tpu.dimension_semantics<parallel>], iteration_bounds = array<i64: 1>, scalar_prefetch = 0 : i64, scratch_operands = 0 : i64, tpu.core_type = #tpu.core_type<tc>, window_params = [{transform_indices = @transform_0, window_bounds = array<i64: 8, 16>}, {pipeline_mode = #tpu.pipeline_mode<synchronous>, transform_indices = @transform_1, window_bounds = array<i64: 4, 16, 16>}, {pipeline_mode = #tpu.pipeline_mode<synchronous>, transform_indices = @transform_2, window_bounds = array<i64: 4, 1, 16>}, {transform_indices = @transform_3, window_bounds = array<i64: 8, 1>}]} {
    %c0 = arith.constant 0 : index
    %c0_0 = arith.constant 0 : index
    %0 = vector.load %arg1[%c0, %c0_0] : memref<8x16xf32, #tpu.memory_space<vmem>>, vector<8x16xf32>
    %c0_1 = arith.constant 0 : index
    %c0_2 = arith.constant 0 : index
    %c0_3 = arith.constant 0 : index
    %1 = vector.load %arg2[%c0_1, %c0_2, %c0_3] : memref<4x16x16xf32, #tpu.memory_space<vmem>>, vector<1x16x16xf32>
    %2 = vector.shape_cast %1 : vector<1x16x16xf32> to vector<16x16xf32>
    %cst = arith.constant dense<0.000000e+00> : vector<8x16xf32>
    %3 = tpu.matmul %0, %2, %cst {dimension_numbers = #tpu.dot_dimension_numbers<[1], [0], [0], [1], [0, 0, 1, 1], [], []>} : vector<8x16xf32>, vector<16x16xf32>, vector<8x16xf32> -> vector<8x16xf32>
    %c0_4 = arith.constant 0 : index
    %c0_5 = arith.constant 0 : index
    %c0_6 = arith.constant 0 : index
    %4 = vector.load %arg3[%c0_4, %c0_5, %c0_6] : memref<4x1x16xf32, #tpu.memory_space<vmem>>, vector<1x1x16xf32>
    %5 = vector.shape_cast %4 : vector<1x1x16xf32> to vector<1x16xf32>
    %6 = vector.broadcast %5 : vector<1x16xf32> to vector<8x16xf32>
    %7 = arith.addf %3, %6 : vector<8x16xf32>
    %cst_7 = arith.constant 0.000000e+00 : f32
    %8 = vector.broadcast %cst_7 : f32 to vector<8x16xf32>
    %9 = arith.cmpf oge, %7, %8 : vector<8x16xf32>
    %cst_8 = arith.constant 0.00999999977 : f32
    %10 = vector.broadcast %cst_8 : f32 to vector<8x16xf32>
    %11 = arith.mulf %10, %7 : vector<8x16xf32>
    %12 = arith.select %9, %7, %11 : vector<8x16xi1>, vector<8x16xf32>
    %c1 = arith.constant 1 : index
    %c0_9 = arith.constant 0 : index
    %c0_10 = arith.constant 0 : index
    %13 = vector.load %arg2[%c1, %c0_9, %c0_10] : memref<4x16x16xf32, #tpu.memory_space<vmem>>, vector<1x16x16xf32>
    %14 = vector.shape_cast %13 : vector<1x16x16xf32> to vector<16x16xf32>
    %cst_11 = arith.constant dense<0.000000e+00> : vector<8x16xf32>
    %15 = tpu.matmul %12, %14, %cst_11 {dimension_numbers = #tpu.dot_dimension_numbers<[1], [0], [0], [1], [0, 0, 1, 1], [], []>} : vector<8x16xf32>, vector<16x16xf32>, vector<8x16xf32> -> vector<8x16xf32>
    %c1_12 = arith.constant 1 : index
    %c0_13 = arith.constant 0 : index
    %c0_14 = arith.constant 0 : index
    %16 = vector.load %arg3[%c1_12, %c0_13, %c0_14] : memref<4x1x16xf32, #tpu.memory_space<vmem>>, vector<1x1x16xf32>
    %17 = vector.shape_cast %16 : vector<1x1x16xf32> to vector<1x16xf32>
    %18 = vector.broadcast %17 : vector<1x16xf32> to vector<8x16xf32>
    %19 = arith.addf %15, %18 : vector<8x16xf32>
    %c2 = arith.constant 2 : index
    %c0_15 = arith.constant 0 : index
    %c0_16 = arith.constant 0 : index
    %20 = vector.load %arg2[%c2, %c0_15, %c0_16] : memref<4x16x16xf32, #tpu.memory_space<vmem>>, vector<1x16x16xf32>
    %21 = vector.shape_cast %20 : vector<1x16x16xf32> to vector<16x16xf32>
    %cst_17 = arith.constant dense<0.000000e+00> : vector<8x16xf32>
    %22 = tpu.matmul %19, %21, %cst_17 {dimension_numbers = #tpu.dot_dimension_numbers<[1], [0], [0], [1], [0, 0, 1, 1], [], []>} : vector<8x16xf32>, vector<16x16xf32>, vector<8x16xf32> -> vector<8x16xf32>
    %c2_18 = arith.constant 2 : index
    %c0_19 = arith.constant 0 : index
    %c0_20 = arith.constant 0 : index
    %23 = vector.load %arg3[%c2_18, %c0_19, %c0_20] : memref<4x1x16xf32, #tpu.memory_space<vmem>>, vector<1x1x16xf32>
    %24 = vector.shape_cast %23 : vector<1x1x16xf32> to vector<1x16xf32>
    %25 = vector.broadcast %24 : vector<1x16xf32> to vector<8x16xf32>
    %26 = arith.addf %22, %25 : vector<8x16xf32>
    %cst_21 = arith.constant 0.000000e+00 : f32
    %27 = vector.broadcast %cst_21 : f32 to vector<8x16xf32>
    %28 = arith.cmpf oge, %26, %27 : vector<8x16xf32>
    %cst_22 = arith.constant 0.00999999977 : f32
    %29 = vector.broadcast %cst_22 : f32 to vector<8x16xf32>
    %30 = arith.mulf %29, %26 : vector<8x16xf32>
    %31 = arith.select %28, %26, %30 : vector<8x16xi1>, vector<8x16xf32>
    %c3 = arith.constant 3 : index
    %c0_23 = arith.constant 0 : index
    %c0_24 = arith.constant 0 : index
    %32 = vector.load %arg2[%c3, %c0_23, %c0_24] : memref<4x16x16xf32, #tpu.memory_space<vmem>>, vector<1x16x16xf32>
    %33 = vector.shape_cast %32 : vector<1x16x16xf32> to vector<16x16xf32>
    %cst_25 = arith.constant dense<0.000000e+00> : vector<8x16xf32>
    %34 = tpu.matmul %31, %33, %cst_25 {dimension_numbers = #tpu.dot_dimension_numbers<[1], [0], [0], [1], [0, 0, 1, 1], [], []>} : vector<8x16xf32>, vector<16x16xf32>, vector<8x16xf32> -> vector<8x16xf32>
    %c3_26 = arith.constant 3 : index
    %c0_27 = arith.constant 0 : index
    %c0_28 = arith.constant 0 : index
    %35 = vector.load %arg3[%c3_26, %c0_27, %c0_28] : memref<4x1x16xf32, #tpu.memory_space<vmem>>, vector<1x1x16xf32>
    %36 = vector.shape_cast %35 : vector<1x1x16xf32> to vector<1x16xf32>
    %37 = vector.broadcast %36 : vector<1x16xf32> to vector<8x16xf32>
    %38 = arith.addf %34, %37 : vector<8x16xf32>
    %39 = vector.extract_strided_slice %38 {offsets = [0, 0], sizes = [8, 1], strides = [1, 1]} : vector<8x16xf32> to vector<8x1xf32>
    %c0_29 = arith.constant 0 : index
    %c0_30 = arith.constant 0 : index
    %40 = vector.load %arg4[%c0_29, %c0_30] : memref<8x1xf32, #tpu.memory_space<vmem>>, vector<8x1xf32>
    tpu.vector_store %arg4[%c0_29, %c0_30], %39 {strides = array<i32>} : memref<8x1xf32, #tpu.memory_space<vmem>>, vector<8x1xf32>,
    return
  }
  func.func @transform_0(%arg0: i32) -> (i32, i32) {
    %c0_i32 = arith.constant 0 : i32
    %c0_i32_0 = arith.constant 0 : i32
    return %arg0, %c0_i32 : i32, i32
  }
  func.func @transform_1(%arg0: i32) -> (i32, i32, i32) {
    %c0_i32 = arith.constant 0 : i32
    %c0_i32_0 = arith.constant 0 : i32
    %c0_i32_1 = arith.constant 0 : i32
    %c0_i32_2 = arith.constant 0 : i32
    return %c0_i32, %c0_i32_0, %c0_i32_1 : i32, i32, i32
  }
  func.func @transform_2(%arg0: i32) -> (i32, i32, i32) {
    %c0_i32 = arith.constant 0 : i32
    %c0_i32_0 = arith.constant 0 : i32
    %c0_i32_1 = arith.constant 0 : i32
    %c0_i32_2 = arith.constant 0 : i32
    return %c0_i32, %c0_i32_0, %c0_i32_1 : i32, i32, i32
  }
  func.func @transform_3(%arg0: i32) -> (i32, i32) {
    %c0_i32 = arith.constant 0 : i32
    %c0_i32_0 = arith.constant 0 : i32
    return %arg0, %c0_i32 : i32, i32
  }
}

</mosaic_0001>

<bundles_post_ra>
// kernel: tpu_custom_call.1
= control target key start
LH: loop header
LB: loop body
LE: loop exit
PB: predicated region body
PF: predicated region fallthrough
CT: control target
= control target key end

     0   :  { %8 = vsyncpa [#allocation3], 0  ;;  %s331_s0 = inlined_call_operand.hbm [shape: f32[8,16], index: 0, kind: input, shape index: {}]   ;;  %s332_s1 = inlined_call_operand.hbm [shape: f32[4,16,16], index: 1, kind: input, shape index: {}]   ;;  %s333_s2 = inlined_call_operand.hbm [shape: f32[4,1,16], index: 2, kind: input, shape index: {}]   ;;  %s334_s3 = inlined_call_operand.vmem [shape: f32[8,1], index: 3, kind: output, shape index: {}]  }
   0x1   :  { %9 = vsyncpa [#allocation5], 0  ;;  %s25_s14 = sshll.u32 %s332_s1, 4  ;;  %s288_s15 = smov [#allocation4]   ;;  %s26_s14 = int_to_ptr.hbm [resolvable:$true] %s25_s14 }
   0x2   :  { %s27_s16 = sshll.u32 %s288_s15, 4  ;;  %s15_s19 = sshll.u32 %s331_s0, 4  ;;  %s28_s16 = int_to_ptr.vmem [resolvable:$true] %s27_s16  ;;  %s16_s19 = int_to_ptr.hbm [resolvable:$true] %s15_s19 }
   0x3   :  { %s289_s20 = smov 128   ;;  %s290_s21 = smov 8  }
   0x4   :  { %33 = dma.hbm_to_vmem [thread:$0]  %s26_s14, 1024, %s28_s16, [#allocation5], %s289_s20, %s289_s20, %s290_s21  }
   0x5   :  { %s291_s22 = smov [#allocation2]   ;;  %s38_s26 = sshll.u32 %s333_s2, 4  ;;  %s39_s26 = int_to_ptr.hbm [resolvable:$true] %s38_s26 }
   0x6   :  { %s17_s23 = sshll.u32 %s291_s22, 4  ;;  %s292_s1 = smov [#allocation6]   ;;  %s18_s23 = int_to_ptr.vmem [resolvable:$true] %s17_s23 }
   0x7   :  { %20 = dma.hbm_to_vmem [thread:$0]  %s16_s19, 128, %s18_s23, [#allocation3]  }
   0x8   :  { %s40_s27 = sshll.u32 %s292_s1, 4  ;;  %s293_s28 = smov 16   ;;  %s41_s27 = int_to_ptr.vmem [resolvable:$true] %s40_s27 }
   0x9   :  { %s294_s29 = smov 1  }
   0xa   :  { %46 = dma.hbm_to_vmem [thread:$0]  %s39_s26, 64, %s41_s27, [#allocation5], %s293_s28, %s293_s28, %s294_s29  }
   0xb   :  { %284 = dma.done.wait [#allocation3], 128  }
   0xc   :  { %285 = vsyncadd [#allocation3], 4294967168 }
   0xd   :  { %286 = dma.done.wait [#allocation5], 1088  }
   0xe   :  { %287 = vsyncadd [#allocation5], 4294966208  ;;  %v61_v0 = vld [vmem:[#allocation4 + $0x8] sm:$0xff]  ;;  %v60_v1 = vld [vmem:[#allocation4] sm:$0xff]  ;;  %vm66_vm0 = vcmask 130048   ;;  %vm189_vm3 = vcmask 7168  }
   0xf   :  { %84 = vmatpush.msra.mxu0 %v61_v0  ;;  %v59_v2 = vld [vmem:[#allocation2] sm:$0xff]  ;;  %v94_v4 = vld [vmem:[#allocation4 + $0x10] sm:$0xff]  ;;  %v208_v5 = vld [vmem:[#allocation6] ss:$0 sm:$0xff] }
  0x10   :  { %v95_v3 = vld [vmem:[#allocation4 + $0x18] sm:$0xff]  ;;  %v126_v10 = vld [vmem:[#allocation4 + $0x28] sm:$0xff]  ;;  %v125_v11 = vld [vmem:[#allocation4 + $0x20] sm:$0xff] }
  0x11   :  { %85 = vmatpush.msra.mxu0 %v60_v1  ;;  %118 = vmatpush.msra.mxu1 %v95_v3  ;;  %v209_v12 = vld [vmem:[#allocation6 + $0x1] ss:$0 sm:$0xff]  ;;  %v160_v15 = vld [vmem:[#allocation4 + $0x38] sm:$0xff]  ;;  %v159_v16 = vld [vmem:[#allocation4 + $0x30] sm:$0xff] }
  0x12   :  { %197 = vmatmul.msk.f32.vlgmr.msra.gmra.mxu0 %vm66_vm0, %v59_v2  ;;  %149 = vmatpush.msra.mxu2 %v126_v10  ;;  %v210_v17 = vld [vmem:[#allocation6 + $0x2] ss:$0 sm:$0xff]  ;;  %v211_v22 = vld [vmem:[#allocation6 + $0x3] ss:$0 sm:$0xff] }
  0x13   :  { %119 = vmatpush.msra.mxu1 %v94_v4  ;;  %183 = vmatpush.msra.mxu3 %v160_v15 }
  0x14   :  { %150 = vmatpush.msra.mxu2 %v125_v11 }
  0x15   :  { %184 = vmatpush.msra.mxu3 %v159_v16 }
  0x8f   :  { %v87_v6 = vpop.f32.mrf.mxu0 }
  0x90   :  { %v88_v7 = vadd.f32 %v208_v5, %v87_v6 }
  0x92   :  { %v91_v8 = vmul.f32 0.01, %v88_v7  ;;  %vm90_vm1 = vcmp.ge.f32.partialorder %v88_v7, 0.0 }
  0x94   :  { %v92_v9 = vsel %vm90_vm1, %v88_v7, %v91_v8 }
  0x95   :  { %198 = vmatmul.msk.f32.vlgmr.msra.gmra.mxu1 %vm66_vm0, %v92_v9 }
 0x112   :  { %v121_v13 = vpop.f32.mrf.mxu1 }
 0x113   :  { %v122_v14 = vadd.f32 %v209_v12, %v121_v13 }
 0x115   :  { %199 = vmatmul.msk.f32.vlgmr.msra.gmra.mxu2 %vm66_vm0, %v122_v14 }
 0x198   :  { %v152_v18 = vpop.f32.mrf.mxu2 }
 0x199   :  { %v153_v19 = vadd.f32 %v210_v17, %v152_v18 }
 0x19b   :  { %v156_v20 = vmul.f32 0.01, %v153_v19  ;;  %vm155_vm2 = vcmp.ge.f32.partialorder %v153_v19, 0.0 }
 0x19d   :  { %v157_v21 = vsel %vm155_vm2, %v153_v19, %v156_v20 }
 0x19e   :  { %200 = vmatmul.msk.f32.vlgmr.msra.gmra.mxu3 %vm66_vm0, %v157_v21 }
 0x221   :  { %v186_v23 = vpop.f32.mrf.mxu3 }
 0x222   :  { %v187_v24 = vadd.f32 %v211_v22, %v186_v23 }
 0x224   :  { %190 = vst.msk [vmem:[%s334_s3] sm:$0xff] %vm189_vm3, %v187_v24 }
 0x225   :  { %195 = vsyncpa [#allocation3], 1 }
 0x226   :  { %196 = vsyncpa [#allocation5], 1 }

</bundles_post_ra>
